<compile_context>
chip_gen: v5e
topology: v5e:2x2
jax: 0.10.0
libtpu: 0.0.40
codegen_flags: <defaults>
</compile_context>

<pallas_src>
import jax
import jax.numpy as jnp
from jax.experimental import pallas as pl
from jax.experimental.pallas import tpu as pltpu


# -----------------------------------------------------------------------------
# Fused kernel: grid axis 0 = batch tile ("parallel").  The L-layer chain is a
# static Python-unrolled loop over VMEM-resident stacked weights.
#
# Per layer l (h is not None branch of ResNetFlowBlock.forward):
#   zu       = relu(x @ [w1x|v1x] + [b1_eff|c1_eff])     (B, H+32)  merged dot
#   z, u     = zu[:, :H], zu[:, H:]
#   u        = relu chain: v2 -> v3 -> v4                (net2 middle layers)
#   no       = [z|u] @ [[w2,0],[0,v5]] + [b2|c5]         (B, 2D)    merged dot
#   x        = x + t_out * (no[:, :D] * no[:, D:])
# -----------------------------------------------------------------------------
def resnet_flow_fused_kernel(
    x_ref, tout_ref, b1c1_ref,
    wA_ref, v2_ref, c2_ref, v3_ref, c3_ref, v4_ref, c4_ref, wB_ref, bB_ref,
    o_ref,
):
    f32 = jnp.float32
    L = tout_ref.shape[0]
    D = x_ref.shape[1]
    Hp = wA_ref.shape[2]          # H + 32
    H = Hp - 32

    x = x_ref[...].astype(f32)

    # Fully unrolled: L is a small static compile-time constant and every
    # operand is already resident in VMEM (static ref[l] indexing, no DMA).
    # TODO(synk): for very large L (L*~30KB approaching the VMEM budget),
    # switch back to a streamed layer grid / lax.fori_loop over a packed slab.
    for l in range(L):
        # merged first matmul of net & net2 (bias term folds h, t, b1, c1)
        zu = jnp.dot(x, wA_ref[l], preferred_element_type=f32) + b1c1_ref[l]
        zu = jnp.maximum(zu, 0.0)
        z = zu[:, :H]             # relu(x @ w1x + b1_eff)   (B, H)
        u = zu[:, H:]             # relu(x @ v1x + c1_eff)   (B, 32)

        # net2 middle layers: 32 -> 32 -> 64 -> 32
        u = jnp.maximum(jnp.dot(u, v2_ref[l], preferred_element_type=f32) + c2_ref[l], 0.0)
        u = jnp.maximum(jnp.dot(u, v3_ref[l], preferred_element_type=f32) + c3_ref[l], 0.0)
        u = jnp.maximum(jnp.dot(u, v4_ref[l], preferred_element_type=f32) + c4_ref[l], 0.0)

        # merged output projection (block-diagonal [[w2,0],[0,v5]])
        zu2 = jnp.concatenate([z, u], axis=-1)                       # (B, H+32)
        no = jnp.dot(zu2, wB_ref[l], preferred_element_type=f32) + bB_ref[l]  # (B, 2D)

        # residual update (t_out precomputed in wrapper, off the EUP path)
        x = x + tout_ref[l] * (no[:, :D] * no[:, D:])

    o_ref[...] = x.astype(o_ref.dtype)


def _pick_batch_tile(B):
    if B <= 512:
        return B
    for tb in (512, 256, 128, 64, 32, 16, 8):
        if B % tb == 0:
            return tb
    return B


# -----------------------------------------------------------------------------
# Wrapper: stack + pack per-layer params, hoist loop-invariant terms,
# one pallas_call with an optional parallel batch-tile axis.
# -----------------------------------------------------------------------------
def resnet_flow_forward(x, h, t, blocks):
    L = len(blocks)
    B, D = x.shape
    if L == 0:                      # degenerate config guard
        return x

    stack = lambda name: jnp.stack([p[name] for p in blocks], axis=0)

    scale = stack("scale")                                   # (L, 1, D)
    w1x, w1h, w1t, b1 = stack("w1x"), stack("w1h"), stack("w1t"), stack("b1")
    w2, b2 = stack("w2"), stack("b2")
    v1x, v1t, c1 = stack("v1x"), stack("v1t"), stack("c1")
    v2, c2 = stack("v2"), stack("c2")
    v3, c3 = stack("v3"), stack("c3")
    v4, c4 = stack("v4"), stack("c4")
    v5, c5 = stack("v5"), stack("c5")
    H = w1x.shape[-1]

    # ---- hoisted, layer-loop-invariant precompute (h, t fixed per block) ----
    t_out = jnp.tanh(t[None, :, :] * scale)                           # (L, B, D)
    b1_eff = jnp.einsum("bd,ldh->lbh", h, w1h) + t[None] * w1t + b1   # (L, B, H)
    c1_eff = t[None] * v1t + c1                                       # (L, B, 32)
    b1c1 = jnp.concatenate([b1_eff, c1_eff], axis=-1)                 # (L, B, H+32)

    # ---- wrapper-side weight packing (cuts MXU ops 7 -> 5 per layer) --------
    wA = jnp.concatenate([w1x, v1x], axis=-1)                         # (L, D, H+32)
    wB = jnp.concatenate(
        [jnp.concatenate([w2, jnp.zeros((L, H, D), w2.dtype)], axis=-1),   # (L, H,  2D)
         jnp.concatenate([jnp.zeros((L, 32, D), v5.dtype), v5], axis=-1)], # (L, 32, 2D)
        axis=1)                                                        # (L, H+32, 2D)
    bB = jnp.concatenate([b2, c5], axis=-1)                            # (L, 1, 2D)

    operands = (x, t_out, b1c1, wA, v2, c2, v3, c3, v4, c4, wB, bB)

    # ---- grid / specs --------------------------------------------------------
    TB = _pick_batch_tile(B)
    grid = (B // TB,)

    def whole(a):                  # constant index_map -> fetched once, resident
        s = a.shape
        return pl.BlockSpec(s, lambda i, _n=len(s): (0,) * _n)

    def batch_tiled3(a):           # (L, B, F) sliced on the batch axis
        Lf, _, F = a.shape
        return pl.BlockSpec((Lf, TB, F), lambda i: (0, i, 0))

    in_specs = [
        pl.BlockSpec((TB, D), lambda i: (i, 0)),     # x
        batch_tiled3(t_out),
        batch_tiled3(b1c1),
        whole(wA), whole(v2), whole(c2), whole(v3), whole(c3),
        whole(v4), whole(c4), whole(wB), whole(bB),
    ]
    out_spec = pl.BlockSpec((TB, D), lambda i: (i, 0))

    # ---- cost + VMEM budget (64 MiB physical on v7x) -------------------------
    flops_per_layer = 2 * B * (D * (H + 32) + 32 * 32 + 32 * 64 + 64 * 32
                               + (H + 32) * 2 * D)
    total_bytes = int(sum(int(a.size) * a.dtype.itemsize for a in operands)
                      + B * D * x.dtype.itemsize)
    cost = pl.CostEstimate(flops=L * flops_per_layer, transcendentals=0,
                           bytes_accessed=total_bytes)
    vmem_limit = int(min(64 << 20, max(32 << 20, 2 * total_bytes + (4 << 20))))

    return pl.pallas_call(
        resnet_flow_fused_kernel,
        out_shape=jax.ShapeDtypeStruct((B, D), x.dtype),
        grid=grid,
        in_specs=in_specs,
        out_specs=out_spec,
        compiler_params=pltpu.CompilerParams(
            dimension_semantics=("parallel",),       # batch tiles independent
            vmem_limit_bytes=vmem_limit),
        cost_estimate=cost,
    )(*operands)


# -----------------------------------------------------------------------------
# Parameter construction (deterministic, synthetic).  Spectral norm is applied
# here as a weight re-parameterization (as in torch.nn.utils.spectral_norm).
# -----------------------------------------------------------------------------
def spectral_normalize(w, key, n_power_iterations=5, eps=1e-12):
    wm = w.T  # PyTorch weight matrix (out, in)
    u = jax.random.normal(key, (wm.shape[0],), dtype=w.dtype)
    u = u / (jnp.linalg.norm(u) + eps)
    v = None
    for _ in range(n_power_iterations):
        v = wm.T @ u
        v = v / (jnp.linalg.norm(v) + eps)
        u = wm @ v
        u = u / (jnp.linalg.norm(u) + eps)
    sigma = u @ (wm @ v)
    return w / sigma


def make_linear(key, in_dim, out_dim, zero_bias=False, sn=False):
    kw, kb, ku = jax.random.split(key, 3)
    bound = 1.0 / jnp.sqrt(in_dim)
    w = jax.random.uniform(kw, (in_dim, out_dim), jnp.float32, -bound, bound)
    b = (jnp.zeros((1, out_dim), jnp.float32) if zero_bias
         else jax.random.uniform(kb, (1, out_dim), jnp.float32, -bound, bound))
    if sn:
        w = spectral_normalize(w, ku)
    return w, b


def make_block_params(key, dim, hidden):
    keys = jax.random.split(key, 8)
    # net: MLP(2*dim+1, [hidden], dim); final layer spectral-normalized,
    # final bias zeroed (stribor MLP convention).
    w1, b1 = make_linear(keys[0], 2 * dim + 1, hidden, sn=False)
    w2, b2 = make_linear(keys[1], hidden, dim, zero_bias=True, sn=True)
    # net2: MLP(dim+1, [32, 32, 64, 32], dim)
    v1, c1 = make_linear(keys[2], dim + 1, 32, sn=False)
    v2, c2 = make_linear(keys[3], 32, 32, sn=True)
    v3, c3 = make_linear(keys[4], 32, 64, sn=True)
    v4, c4 = make_linear(keys[5], 64, 32, sn=True)
    v5, c5 = make_linear(keys[6], 32, dim, zero_bias=True, sn=True)
    # TimeTanh scale (1, dim)
    scale = jax.random.normal(keys[7], (1, dim), jnp.float32)
    # TODO(synk): net3 / xh_net are constructed in __init__ but never used in
    # forward(); omitted here.
    return dict(
        scale=scale,
        w1x=w1[:dim], w1h=w1[dim:2 * dim], w1t=w1[2 * dim:2 * dim + 1], b1=b1,
        w2=w2, b2=b2,
        v1x=v1[:dim], v1t=v1[dim:dim + 1], c1=c1,
        v2=v2, c2=c2, v3=v3, c3=c3, v4=v4, c4=c4, v5=v5, c5=c5,
    )


# -----------------------------------------------------------------------------
# Pure-JAX reference (for in-script validation)
# -----------------------------------------------------------------------------
def ref_block(x, h, t, p):
    t_out = jnp.tanh(t * p["scale"])
    xht = jnp.concatenate([x, h, t], axis=-1)
    w1 = jnp.concatenate([p["w1x"], p["w1h"], p["w1t"]], axis=0)
    z = jnp.maximum(xht @ w1 + p["b1"], 0.0)
    net_out = z @ p["w2"] + p["b2"]
    xt = jnp.concatenate([x, t], axis=-1)
    v1 = jnp.concatenate([p["v1x"], p["v1t"]], axis=0)
    u = jnp.maximum(xt @ v1 + p["c1"], 0.0)
    u = jnp.maximum(u @ p["v2"] + p["c2"], 0.0)
    u = jnp.maximum(u @ p["v3"] + p["c3"], 0.0)
    u = jnp.maximum(u @ p["v4"] + p["c4"], 0.0)
    net2_out = u @ p["v5"] + p["c5"]
    return x + t_out * (net_out * net2_out)


if __name__ == "__main__":
    dim = 8          # input/output size
    hidden = 64      # hidden_dims = [64]
    num_layers = 2
    batch = 8

    key = jax.random.PRNGKey(0)
    kx, kh, kt, kp = jax.random.split(key, 4)
    x = jax.random.normal(kx, (batch, dim), jnp.float32)
    h = jax.random.normal(kh, (batch, dim), jnp.float32)
    t = jax.random.uniform(kt, (batch, 1), jnp.float32)

    blocks = [make_block_params(k, dim, hidden)
              for k in jax.random.split(kp, num_layers)]

    out = resnet_flow_forward(x, h, t, blocks)
    out = jax.block_until_ready(out)

    # validate against pure-JAX reference
    ref = x
    for p in blocks:
        ref = ref_block(ref, h, t, p)
    assert out.shape == (batch, dim)
    assert jnp.allclose(out, ref, atol=1e-3, rtol=1e-3), "mismatch vs reference"

    print("KERNEL_OK")
</pallas_src>

<mosaic_0001>
module attributes {stable_mosaic.version = 11 : i64} {
  func.func @resnet_flow_fused_kernel(%arg0: i32, %arg1: memref<8x8xf32, #tpu.memory_space<vmem>>, %arg2: memref<2x8x8xf32, #tpu.memory_space<vmem>>, %arg3: memref<2x8x96xf32, #tpu.memory_space<vmem>>, %arg4: memref<2x8x96xf32, #tpu.memory_space<vmem>>, %arg5: memref<2x32x32xf32, #tpu.memory_space<vmem>>, %arg6: memref<2x1x32xf32, #tpu.memory_space<vmem>>, %arg7: memref<2x32x64xf32, #tpu.memory_space<vmem>>, %arg8: memref<2x1x64xf32, #tpu.memory_space<vmem>>, %arg9: memref<2x64x32xf32, #tpu.memory_space<vmem>>, %arg10: memref<2x1x32xf32, #tpu.memory_space<vmem>>, %arg11: memref<2x96x16xf32, #tpu.memory_space<vmem>>, %arg12: memref<2x1x16xf32, #tpu.memory_space<vmem>>, %arg13: memref<8x8xf32, #tpu.memory_space<vmem>>) attributes {dimension_semantics = [#tpu.dimension_semantics<parallel>], iteration_bounds = array<i64: 1>, scalar_prefetch = 0 : i64, scratch_operands = 0 : i64, tpu.core_type = #tpu.core_type<tc>, window_params = [{transform_indices = @transform_0, window_bounds = array<i64: 8, 8>}, {transform_indices = @transform_1, window_bounds = array<i64: 2, 8, 8>}, {transform_indices = @transform_2, window_bounds = array<i64: 2, 8, 96>}, {pipeline_mode = #tpu.pipeline_mode<synchronous>, transform_indices = @transform_3, window_bounds = array<i64: 2, 8, 96>}, {pipeline_mode = #tpu.pipeline_mode<synchronous>, transform_indices = @transform_4, window_bounds = array<i64: 2, 32, 32>}, {pipeline_mode = #tpu.pipeline_mode<synchronous>, transform_indices = @transform_5, window_bounds = array<i64: 2, 1, 32>}, {pipeline_mode = #tpu.pipeline_mode<synchronous>, transform_indices = @transform_6, window_bounds = array<i64: 2, 32, 64>}, {pipeline_mode = #tpu.pipeline_mode<synchronous>, transform_indices = @transform_7, window_bounds = array<i64: 2, 1, 64>}, {pipeline_mode = #tpu.pipeline_mode<synchronous>, transform_indices = @transform_8, window_bounds = array<i64: 2, 64, 32>}, {pipeline_mode = #tpu.pipeline_mode<synchronous>, transform_indices = @transform_9, window_bounds = array<i64: 2, 1, 32>}, {pipeline_mode = #tpu.pipeline_mode<synchronous>, transform_indices = @transform_10, window_bounds = array<i64: 2, 96, 16>}, {pipeline_mode = #tpu.pipeline_mode<synchronous>, transform_indices = @transform_11, window_bounds = array<i64: 2, 1, 16>}, {transform_indices = @transform_12, window_bounds = array<i64: 8, 8>}]} {
    %c0 = arith.constant 0 : index
    %c0_0 = arith.constant 0 : index
    %0 = vector.load %arg1[%c0, %c0_0] : memref<8x8xf32, #tpu.memory_space<vmem>>, vector<8x8xf32>
    %c0_1 = arith.constant 0 : index
    %c0_2 = arith.constant 0 : index
    %c0_3 = arith.constant 0 : index
    %1 = vector.load %arg4[%c0_1, %c0_2, %c0_3] : memref<2x8x96xf32, #tpu.memory_space<vmem>>, vector<1x8x96xf32>
    %2 = vector.shape_cast %1 : vector<1x8x96xf32> to vector<8x96xf32>
    %cst = arith.constant dense<0.000000e+00> : vector<8x96xf32>
    %3 = tpu.matmul %0, %2, %cst {dimension_numbers = #tpu.dot_dimension_numbers<[1], [0], [0], [1], [0, 0, 1, 1], [], []>} : vector<8x8xf32>, vector<8x96xf32>, vector<8x96xf32> -> vector<8x96xf32>
    %c0_4 = arith.constant 0 : index
    %c0_5 = arith.constant 0 : index
    %c0_6 = arith.constant 0 : index
    %4 = vector.load %arg3[%c0_4, %c0_5, %c0_6] : memref<2x8x96xf32, #tpu.memory_space<vmem>>, vector<1x8x96xf32>
    %5 = vector.shape_cast %4 : vector<1x8x96xf32> to vector<8x96xf32>
    %6 = arith.addf %3, %5 : vector<8x96xf32>
    %cst_7 = arith.constant 0.000000e+00 : f32
    %7 = vector.broadcast %cst_7 : f32 to vector<8x96xf32>
    %8 = arith.maximumf %6, %7 : vector<8x96xf32>
    %9 = vector.extract_strided_slice %8 {offsets = [0, 0], sizes = [8, 64], strides = [1, 1]} : vector<8x96xf32> to vector<8x64xf32>
    %10 = vector.extract_strided_slice %8 {offsets = [0, 64], sizes = [8, 32], strides = [1, 1]} : vector<8x96xf32> to vector<8x32xf32>
    %c0_8 = arith.constant 0 : index
    %c0_9 = arith.constant 0 : index
    %c0_10 = arith.constant 0 : index
    %11 = vector.load %arg5[%c0_8, %c0_9, %c0_10] : memref<2x32x32xf32, #tpu.memory_space<vmem>>, vector<1x32x32xf32>
    %12 = vector.shape_cast %11 : vector<1x32x32xf32> to vector<32x32xf32>
    %cst_11 = arith.constant dense<0.000000e+00> : vector<8x32xf32>
    %13 = tpu.matmul %10, %12, %cst_11 {dimension_numbers = #tpu.dot_dimension_numbers<[1], [0], [0], [1], [0, 0, 1, 1], [], []>} : vector<8x32xf32>, vector<32x32xf32>, vector<8x32xf32> -> vector<8x32xf32>
    %c0_12 = arith.constant 0 : index
    %c0_13 = arith.constant 0 : index
    %c0_14 = arith.constant 0 : index
    %14 = vector.load %arg6[%c0_12, %c0_13, %c0_14] : memref<2x1x32xf32, #tpu.memory_space<vmem>>, vector<1x1x32xf32>
    %15 = vector.shape_cast %14 : vector<1x1x32xf32> to vector<1x32xf32>
    %16 = vector.broadcast %15 : vector<1x32xf32> to vector<8x32xf32>
    %17 = arith.addf %13, %16 : vector<8x32xf32>
    %cst_15 = arith.constant 0.000000e+00 : f32
    %18 = vector.broadcast %cst_15 : f32 to vector<8x32xf32>
    %19 = arith.maximumf %17, %18 : vector<8x32xf32>
    %c0_16 = arith.constant 0 : index
    %c0_17 = arith.constant 0 : index
    %c0_18 = arith.constant 0 : index
    %20 = vector.load %arg7[%c0_16, %c0_17, %c0_18] : memref<2x32x64xf32, #tpu.memory_space<vmem>>, vector<1x32x64xf32>
    %21 = vector.shape_cast %20 : vector<1x32x64xf32> to vector<32x64xf32>
    %cst_19 = arith.constant dense<0.000000e+00> : vector<8x64xf32>
    %22 = tpu.matmul %19, %21, %cst_19 {dimension_numbers = #tpu.dot_dimension_numbers<[1], [0], [0], [1], [0, 0, 1, 1], [], []>} : vector<8x32xf32>, vector<32x64xf32>, vector<8x64xf32> -> vector<8x64xf32>
    %c0_20 = arith.constant 0 : index
    %c0_21 = arith.constant 0 : index
    %c0_22 = arith.constant 0 : index
    %23 = vector.load %arg8[%c0_20, %c0_21, %c0_22] : memref<2x1x64xf32, #tpu.memory_space<vmem>>, vector<1x1x64xf32>
    %24 = vector.shape_cast %23 : vector<1x1x64xf32> to vector<1x64xf32>
    %25 = vector.broadcast %24 : vector<1x64xf32> to vector<8x64xf32>
    %26 = arith.addf %22, %25 : vector<8x64xf32>
    %cst_23 = arith.constant 0.000000e+00 : f32
    %27 = vector.broadcast %cst_23 : f32 to vector<8x64xf32>
    %28 = arith.maximumf %26, %27 : vector<8x64xf32>
    %c0_24 = arith.constant 0 : index
    %c0_25 = arith.constant 0 : index
    %c0_26 = arith.constant 0 : index
    %29 = vector.load %arg9[%c0_24, %c0_25, %c0_26] : memref<2x64x32xf32, #tpu.memory_space<vmem>>, vector<1x64x32xf32>
    %30 = vector.shape_cast %29 : vector<1x64x32xf32> to vector<64x32xf32>
    %cst_27 = arith.constant dense<0.000000e+00> : vector<8x32xf32>
    %31 = tpu.matmul %28, %30, %cst_27 {dimension_numbers = #tpu.dot_dimension_numbers<[1], [0], [0], [1], [0, 0, 1, 1], [], []>} : vector<8x64xf32>, vector<64x32xf32>, vector<8x32xf32> -> vector<8x32xf32>
    %c0_28 = arith.constant 0 : index
    %c0_29 = arith.constant 0 : index
    %c0_30 = arith.constant 0 : index
    %32 = vector.load %arg10[%c0_28, %c0_29, %c0_30] : memref<2x1x32xf32, #tpu.memory_space<vmem>>, vector<1x1x32xf32>
    %33 = vector.shape_cast %32 : vector<1x1x32xf32> to vector<1x32xf32>
    %34 = vector.broadcast %33 : vector<1x32xf32> to vector<8x32xf32>
    %35 = arith.addf %31, %34 : vector<8x32xf32>
    %cst_31 = arith.constant 0.000000e+00 : f32
    %36 = vector.broadcast %cst_31 : f32 to vector<8x32xf32>
    %37 = arith.maximumf %35, %36 : vector<8x32xf32>
    %38 = tpu.concatenate %9, %37 in 1 : vector<8x64xf32>, vector<8x32xf32> -> vector<8x96xf32>
    %c0_32 = arith.constant 0 : index
    %c0_33 = arith.constant 0 : index
    %c0_34 = arith.constant 0 : index
    %39 = vector.load %arg11[%c0_32, %c0_33, %c0_34] : memref<2x96x16xf32, #tpu.memory_space<vmem>>, vector<1x96x16xf32>
    %40 = vector.shape_cast %39 : vector<1x96x16xf32> to vector<96x16xf32>
    %cst_35 = arith.constant dense<0.000000e+00> : vector<8x16xf32>
    %41 = tpu.matmul %38, %40, %cst_35 {dimension_numbers = #tpu.dot_dimension_numbers<[1], [0], [0], [1], [0, 0, 1, 1], [], []>} : vector<8x96xf32>, vector<96x16xf32>, vector<8x16xf32> -> vector<8x16xf32>
    %c0_36 = arith.constant 0 : index
    %c0_37 = arith.constant 0 : index
    %c0_38 = arith.constant 0 : index
    %42 = vector.load %arg12[%c0_36, %c0_37, %c0_38] : memref<2x1x16xf32, #tpu.memory_space<vmem>>, vector<1x1x16xf32>
    %43 = vector.shape_cast %42 : vector<1x1x16xf32> to vector<1x16xf32>
    %44 = vector.broadcast %43 : vector<1x16xf32> to vector<8x16xf32>
    %45 = arith.addf %41, %44 : vector<8x16xf32>
    %c0_39 = arith.constant 0 : index
    %c0_40 = arith.constant 0 : index
    %c0_41 = arith.constant 0 : index
    %46 = vector.load %arg2[%c0_39, %c0_40, %c0_41] : memref<2x8x8xf32, #tpu.memory_space<vmem>>, vector<1x8x8xf32>
    %47 = vector.shape_cast %46 : vector<1x8x8xf32> to vector<8x8xf32>
    %48 = vector.extract_strided_slice %45 {offsets = [0, 0], sizes = [8, 8], strides = [1, 1]} : vector<8x16xf32> to vector<8x8xf32>
    %49 = vector.extract_strided_slice %45 {offsets = [0, 8], sizes = [8, 8], strides = [1, 1]} : vector<8x16xf32> to vector<8x8xf32>
    %50 = arith.mulf %48, %49 : vector<8x8xf32>
    %51 = arith.mulf %47, %50 : vector<8x8xf32>
    %52 = arith.addf %0, %51 : vector<8x8xf32>
    %c1 = arith.constant 1 : index
    %c0_42 = arith.constant 0 : index
    %c0_43 = arith.constant 0 : index
    %53 = vector.load %arg4[%c1, %c0_42, %c0_43] : memref<2x8x96xf32, #tpu.memory_space<vmem>>, vector<1x8x96xf32>
    %54 = vector.shape_cast %53 : vector<1x8x96xf32> to vector<8x96xf32>
    %cst_44 = arith.constant dense<0.000000e+00> : vector<8x96xf32>
    %55 = tpu.matmul %52, %54, %cst_44 {dimension_numbers = #tpu.dot_dimension_numbers<[1], [0], [0], [1], [0, 0, 1, 1], [], []>} : vector<8x8xf32>, vector<8x96xf32>, vector<8x96xf32> -> vector<8x96xf32>
    %c1_45 = arith.constant 1 : index
    %c0_46 = arith.constant 0 : index
    %c0_47 = arith.constant 0 : index
    %56 = vector.load %arg3[%c1_45, %c0_46, %c0_47] : memref<2x8x96xf32, #tpu.memory_space<vmem>>, vector<1x8x96xf32>
    %57 = vector.shape_cast %56 : vector<1x8x96xf32> to vector<8x96xf32>
    %58 = arith.addf %55, %57 : vector<8x96xf32>
    %cst_48 = arith.constant 0.000000e+00 : f32
    %59 = vector.broadcast %cst_48 : f32 to vector<8x96xf32>
    %60 = arith.maximumf %58, %59 : vector<8x96xf32>
    %61 = vector.extract_strided_slice %60 {offsets = [0, 0], sizes = [8, 64], strides = [1, 1]} : vector<8x96xf32> to vector<8x64xf32>
    %62 = vector.extract_strided_slice %60 {offsets = [0, 64], sizes = [8, 32], strides = [1, 1]} : vector<8x96xf32> to vector<8x32xf32>
    %c1_49 = arith.constant 1 : index
    %c0_50 = arith.constant 0 : index
    %c0_51 = arith.constant 0 : index
    %63 = vector.load %arg5[%c1_49, %c0_50, %c0_51] : memref<2x32x32xf32, #tpu.memory_space<vmem>>, vector<1x32x32xf32>
    %64 = vector.shape_cast %63 : vector<1x32x32xf32> to vector<32x32xf32>
    %cst_52 = arith.constant dense<0.000000e+00> : vector<8x32xf32>
    %65 = tpu.matmul %62, %64, %cst_52 {dimension_numbers = #tpu.dot_dimension_numbers<[1], [0], [0], [1], [0, 0, 1, 1], [], []>} : vector<8x32xf32>, vector<32x32xf32>, vector<8x32xf32> -> vector<8x32xf32>
    %c1_53 = arith.constant 1 : index
    %c0_54 = arith.constant 0 : index
    %c0_55 = arith.constant 0 : index
    %66 = vector.load %arg6[%c1_53, %c0_54, %c0_55] : memref<2x1x32xf32, #tpu.memory_space<vmem>>, vector<1x1x32xf32>
    %67 = vector.shape_cast %66 : vector<1x1x32xf32> to vector<1x32xf32>
    %68 = vector.broadcast %67 : vector<1x32xf32> to vector<8x32xf32>
    %69 = arith.addf %65, %68 : vector<8x32xf32>
    %cst_56 = arith.constant 0.000000e+00 : f32
    %70 = vector.broadcast %cst_56 : f32 to vector<8x32xf32>
    %71 = arith.maximumf %69, %70 : vector<8x32xf32>
    %c1_57 = arith.constant 1 : index
    %c0_58 = arith.constant 0 : index
    %c0_59 = arith.constant 0 : index
    %72 = vector.load %arg7[%c1_57, %c0_58, %c0_59] : memref<2x32x64xf32, #tpu.memory_space<vmem>>, vector<1x32x64xf32>
    %73 = vector.shape_cast %72 : vector<1x32x64xf32> to vector<32x64xf32>
    %cst_60 = arith.constant dense<0.000000e+00> : vector<8x64xf32>
    %74 = tpu.matmul %71, %73, %cst_60 {dimension_numbers = #tpu.dot_dimension_numbers<[1], [0], [0], [1], [0, 0, 1, 1], [], []>} : vector<8x32xf32>, vector<32x64xf32>, vector<8x64xf32> -> vector<8x64xf32>
    %c1_61 = arith.constant 1 : index
    %c0_62 = arith.constant 0 : index
    %c0_63 = arith.constant 0 : index
    %75 = vector.load %arg8[%c1_61, %c0_62, %c0_63] : memref<2x1x64xf32, #tpu.memory_space<vmem>>, vector<1x1x64xf32>
    %76 = vector.shape_cast %75 : vector<1x1x64xf32> to vector<1x64xf32>
    %77 = vector.broadcast %76 : vector<1x64xf32> to vector<8x64xf32>
    %78 = arith.addf %74, %77 : vector<8x64xf32>
    %cst_64 = arith.constant 0.000000e+00 : f32
    %79 = vector.broadcast %cst_64 : f32 to vector<8x64xf32>
    %80 = arith.maximumf %78, %79 : vector<8x64xf32>
    %c1_65 = arith.constant 1 : index
    %c0_66 = arith.constant 0 : index
    %c0_67 = arith.constant 0 : index
    %81 = vector.load %arg9[%c1_65, %c0_66, %c0_67] : memref<2x64x32xf32, #tpu.memory_space<vmem>>, vector<1x64x32xf32>
    %82 = vector.shape_cast %81 : vector<1x64x32xf32> to vector<64x32xf32>
    %cst_68 = arith.constant dense<0.000000e+00> : vector<8x32xf32>
    %83 = tpu.matmul %80, %82, %cst_68 {dimension_numbers = #tpu.dot_dimension_numbers<[1], [0], [0], [1], [0, 0, 1, 1], [], []>} : vector<8x64xf32>, vector<64x32xf32>, vector<8x32xf32> -> vector<8x32xf32>
    %c1_69 = arith.constant 1 : index
    %c0_70 = arith.constant 0 : index
    %c0_71 = arith.constant 0 : index
    %84 = vector.load %arg10[%c1_69, %c0_70, %c0_71] : memref<2x1x32xf32, #tpu.memory_space<vmem>>, vector<1x1x32xf32>
    %85 = vector.shape_cast %84 : vector<1x1x32xf32> to vector<1x32xf32>
    %86 = vector.broadcast %85 : vector<1x32xf32> to vector<8x32xf32>
    %87 = arith.addf %83, %86 : vector<8x32xf32>
    %cst_72 = arith.constant 0.000000e+00 : f32
    %88 = vector.broadcast %cst_72 : f32 to vector<8x32xf32>
    %89 = arith.maximumf %87, %88 : vector<8x32xf32>
    %90 = tpu.concatenate %61, %89 in 1 : vector<8x64xf32>, vector<8x32xf32> -> vector<8x96xf32>
    %c1_73 = arith.constant 1 : index
    %c0_74 = arith.constant 0 : index
    %c0_75 = arith.constant 0 : index
    %91 = vector.load %arg11[%c1_73, %c0_74, %c0_75] : memref<2x96x16xf32, #tpu.memory_space<vmem>>, vector<1x96x16xf32>
    %92 = vector.shape_cast %91 : vector<1x96x16xf32> to vector<96x16xf32>
    %cst_76 = arith.constant dense<0.000000e+00> : vector<8x16xf32>
    %93 = tpu.matmul %90, %92, %cst_76 {dimension_numbers = #tpu.dot_dimension_numbers<[1], [0], [0], [1], [0, 0, 1, 1], [], []>} : vector<8x96xf32>, vector<96x16xf32>, vector<8x16xf32> -> vector<8x16xf32>
    %c1_77 = arith.constant 1 : index
    %c0_78 = arith.constant 0 : index
    %c0_79 = arith.constant 0 : index
    %94 = vector.load %arg12[%c1_77, %c0_78, %c0_79] : memref<2x1x16xf32, #tpu.memory_space<vmem>>, vector<1x1x16xf32>
    %95 = vector.shape_cast %94 : vector<1x1x16xf32> to vector<1x16xf32>
    %96 = vector.broadcast %95 : vector<1x16xf32> to vector<8x16xf32>
    %97 = arith.addf %93, %96 : vector<8x16xf32>
    %c1_80 = arith.constant 1 : index
    %c0_81 = arith.constant 0 : index
    %c0_82 = arith.constant 0 : index
    %98 = vector.load %arg2[%c1_80, %c0_81, %c0_82] : memref<2x8x8xf32, #tpu.memory_space<vmem>>, vector<1x8x8xf32>
    %99 = vector.shape_cast %98 : vector<1x8x8xf32> to vector<8x8xf32>
    %100 = vector.extract_strided_slice %97 {offsets = [0, 0], sizes = [8, 8], strides = [1, 1]} : vector<8x16xf32> to vector<8x8xf32>
    %101 = vector.extract_strided_slice %97 {offsets = [0, 8], sizes = [8, 8], strides = [1, 1]} : vector<8x16xf32> to vector<8x8xf32>
    %102 = arith.mulf %100, %101 : vector<8x8xf32>
    %103 = arith.mulf %99, %102 : vector<8x8xf32>
    %104 = arith.addf %52, %103 : vector<8x8xf32>
    %c0_83 = arith.constant 0 : index
    %c0_84 = arith.constant 0 : index
    %105 = vector.load %arg13[%c0_83, %c0_84] : memref<8x8xf32, #tpu.memory_space<vmem>>, vector<8x8xf32>
    tpu.vector_store %arg13[%c0_83, %c0_84], %104 {strides = array<i32>} : memref<8x8xf32, #tpu.memory_space<vmem>>, vector<8x8xf32>,
    return
  }
  func.func @transform_0(%arg0: i32) -> (i32, i32) {
    %c0_i32 = arith.constant 0 : i32
    %c0_i32_0 = arith.constant 0 : i32
    return %arg0, %c0_i32 : i32, i32
  }
  func.func @transform_1(%arg0: i32) -> (i32, i32, i32) {
    %c0_i32 = arith.constant 0 : i32
    %c0_i32_0 = arith.constant 0 : i32
    %c0_i32_1 = arith.constant 0 : i32
    return %c0_i32, %arg0, %c0_i32_0 : i32, i32, i32
  }
  func.func @transform_2(%arg0: i32) -> (i32, i32, i32) {
    %c0_i32 = arith.constant 0 : i32
    %c0_i32_0 = arith.constant 0 : i32
    %c0_i32_1 = arith.constant 0 : i32
    return %c0_i32, %arg0, %c0_i32_0 : i32, i32, i32
  }
  func.func @transform_3(%arg0: i32) -> (i32, i32, i32) {
    %c0_i32 = arith.constant 0 : i32
    %c0_i32_0 = arith.constant 0 : i32
    %c0_i32_1 = arith.constant 0 : i32
    %c0_i32_2 = arith.constant 0 : i32
    return %c0_i32, %c0_i32_0, %c0_i32_1 : i32, i32, i32
  }
  func.func @transform_4(%arg0: i32) -> (i32, i32, i32) {
    %c0_i32 = arith.constant 0 : i32
    %c0_i32_0 = arith.constant 0 : i32
    %c0_i32_1 = arith.constant 0 : i32
    %c0_i32_2 = arith.constant 0 : i32
    return %c0_i32, %c0_i32_0, %c0_i32_1 : i32, i32, i32
  }
  func.func @transform_5(%arg0: i32) -> (i32, i32, i32) {
    %c0_i32 = arith.constant 0 : i32
    %c0_i32_0 = arith.constant 0 : i32
    %c0_i32_1 = arith.constant 0 : i32
    %c0_i32_2 = arith.constant 0 : i32
    return %c0_i32, %c0_i32_0, %c0_i32_1 : i32, i32, i32
  }
  func.func @transform_6(%arg0: i32) -> (i32, i32, i32) {
    %c0_i32 = arith.constant 0 : i32
    %c0_i32_0 = arith.constant 0 : i32
    %c0_i32_1 = arith.constant 0 : i32
    %c0_i32_2 = arith.constant 0 : i32
    return %c0_i32, %c0_i32_0, %c0_i32_1 : i32, i32, i32
  }
  func.func @transform_7(%arg0: i32) -> (i32, i32, i32) {
    %c0_i32 = arith.constant 0 : i32
    %c0_i32_0 = arith.constant 0 : i32
    %c0_i32_1 = arith.constant 0 : i32
    %c0_i32_2 = arith.constant 0 : i32
    return %c0_i32, %c0_i32_0, %c0_i32_1 : i32, i32, i32
  }
  func.func @transform_8(%arg0: i32) -> (i32, i32, i32) {
    %c0_i32 = arith.constant 0 : i32
    %c0_i32_0 = arith.constant 0 : i32
    %c0_i32_1 = arith.constant 0 : i32
    %c0_i32_2 = arith.constant 0 : i32
    return %c0_i32, %c0_i32_0, %c0_i32_1 : i32, i32, i32
  }
  func.func @transform_9(%arg0: i32) -> (i32, i32, i32) {
    %c0_i32 = arith.constant 0 : i32
    %c0_i32_0 = arith.constant 0 : i32
    %c0_i32_1 = arith.constant 0 : i32
    %c0_i32_2 = arith.constant 0 : i32
    return %c0_i32, %c0_i32_0, %c0_i32_1 : i32, i32, i32
  }
  func.func @transform_10(%arg0: i32) -> (i32, i32, i32) {
    %c0_i32 = arith.constant 0 : i32
    %c0_i32_0 = arith.constant 0 : i32
    %c0_i32_1 = arith.constant 0 : i32
    %c0_i32_2 = arith.constant 0 : i32
    return %c0_i32, %c0_i32_0, %c0_i32_1 : i32, i32, i32
  }
  func.func @transform_11(%arg0: i32) -> (i32, i32, i32) {
    %c0_i32 = arith.constant 0 : i32
    %c0_i32_0 = arith.constant 0 : i32
    %c0_i32_1 = arith.constant 0 : i32
    %c0_i32_2 = arith.constant 0 : i32
    return %c0_i32, %c0_i32_0, %c0_i32_1 : i32, i32, i32
  }
  func.func @transform_12(%arg0: i32) -> (i32, i32) {
    %c0_i32 = arith.constant 0 : i32
    %c0_i32_0 = arith.constant 0 : i32
    return %arg0, %c0_i32 : i32, i32
  }
}

</mosaic_0001>

<bundles_post_ra>
// kernel: tpu_custom_call.1
= control target key start
LH: loop header
LB: loop body
LE: loop exit
PB: predicated region body
PF: predicated region fallthrough
CT: control target
= control target key end

     0   :  { %vm45_vm0 = vcmask 64512   ;;  %s842_s0 = inlined_call_operand.vmem [shape: f32[8,8], index: 0, kind: input, shape index: {}]   ;;  %s843_s1 = inlined_call_operand.vmem [shape: f32[2,8,8], index: 1, kind: input, shape index: {}]   ;;  %s844_s2 = inlined_call_operand.vmem [shape: f32[2,8,96], index: 2, kind: input, shape index: {}]   ;;  %s845_s3 = inlined_call_operand.vmem [shape: f32[2,8,96], index: 3, kind: input, shape index: {}]   ;;  %s846_s4 = inlined_call_operand.vmem [shape: f32[2,32,32], index: 4, kind: input, shape index: {}]   ;;  %s847_s5 = inlined_call_operand.vmem [shape: f32[2,1,32], index: 5, kind: input, shape index: {}]   ;;  %s848_s6 = inlined_call_operand.vmem [shape: f32[2,32,64], index: 6, kind: input, shape index: {}]   ;;  %s849_s7 = inlined_call_operand.vmem [shape: f32[2,1,64], index: 7, kind: input, shape index: {}]   ;;  %s850_s8 = inlined_call_operand.vmem [shape: f32[2,64,32], index: 8, kind: input, shape index: {}]   ;;  %s851_s9 = inlined_call_operand.vmem [shape: f32[2,1,32], index: 9, kind: input, shape index: {}]   ;;  %s852_s10 = inlined_call_operand.vmem [shape: f32[2,96,16], index: 10, kind: input, shape index: {}]   ;;  %s853_s11 = inlined_call_operand.vmem [shape: f32[2,1,16], index: 11, kind: input, shape index: {}]   ;;  %s854_s12 = inlined_call_operand.hbm [shape: f32[8,8], index: 12, kind: output, shape index: {}]  }
   0x1   :  { %v43_v0 = vld [vmem:[%s845_s3] sm:$0xff] }
   0x2   :  { %v591_v1 = vld [vmem:[%s842_s0] sm:$0xff]  ;;  %64 = vmatpush.msra.mxu0 %v43_v0 }
   0x3   :  { %435 = vmatmul.msk.f32.vlgmr.msra.gmra.mxu0 %vm45_vm0, %v591_v1 }
   0x4   :  { %17 = vsyncpa [#allocation3], 0  ;;  %v73_v2 = vld [vmem:[%s846_s4 + $0x18] sm:$0xff]  ;;  %v72_v3 = vld [vmem:[%s846_s4 + $0x10] sm:$0xff]  ;;  %s517_s16 = smov 64   ;;  %vm81_vm1 = vcmask 261120  }
   0x5   :  { %96 = vmatpush.msra.mxu1 %v73_v2  ;;  %v71_v4 = vld [vmem:[%s846_s4 + $0x8] sm:$0xff]  ;;  %v70_v5 = vld [vmem:[%s846_s4] sm:$0xff]  ;;  %v108_v10 = vld [vmem:[%s848_s6 + $0x18] sm:$0xff]  ;;  %vm149_vm2 = vcmask 523264   ;;  %vm195_vm3 = vcmask 785408   ;;  %s518_s21 = smov 120  }
   0x6   :  { %v44_v6 = vld [vmem:[%s844_s2] sm:$0xff]  ;;  %128 = vmatpush.msra.mxu2 %v108_v10  ;;  %v107_v12 = vld [vmem:[%s848_s6 + $0x10] sm:$0xff]  ;;  %v106_v13 = vld [vmem:[%s848_s6 + $0x8] sm:$0xff]  ;;  %s426_s24 = sshll.u32 %s854_s12, 4  ;;  %s427_s24 = int_to_ptr.hbm [resolvable:$true] %s426_s24 }
   0x7   :  { %97 = vmatpush.msra.mxu1 %v72_v3  ;;  %v105_v14 = vld [vmem:[%s848_s6] sm:$0xff]  ;;  %v144_v15 = vld [vmem:[%s850_s8 + $0x38] sm:$0xff]  ;;  %v143_v16 = vld [vmem:[%s850_s8 + $0x30] sm:$0xff] }
   0x8   :  { %129 = vmatpush.msra.mxu2 %v107_v12  ;;  %161 = vmatpush.msra.mxu3 %v144_v15  ;;  %v142_v17 = vld [vmem:[%s850_s8 + $0x28] sm:$0xff]  ;;  %v141_v18 = vld [vmem:[%s850_s8 + $0x20] sm:$0xff]  ;;  %v140_v19 = vld [vmem:[%s850_s8 + $0x18] sm:$0xff] }
   0x9   :  { %98 = vmatpush.msra.mxu1 %v71_v4  ;;  %v483_v20 = vld [vmem:[%s847_s5] ss:$0 sm:$0xff]  ;;  %v139_v24 = vld [vmem:[%s850_s8 + $0x10] sm:$0xff]  ;;  %v138_v25 = vld [vmem:[%s850_s8 + $0x8] sm:$0xff] }
   0xa   :  { %130 = vmatpush.msra.mxu2 %v106_v13  ;;  %162 = vmatpush.msra.mxu3 %v143_v16  ;;  %v137_v26 = vld [vmem:[%s850_s8] sm:$0xff]  ;;  %v190_v31 = vld [vmem:[%s852_s10 + $0x58] sm:$0xff]  ;;  %v189_v32 = vld [vmem:[%s852_s10 + $0x50] sm:$0xff] }
   0xb   :  { %99 = vmatpush.msra.mxu1 %v70_v5  ;;  %v484_v27 = vld [vmem:[%s849_s7] ss:$0 sm:$0xff]  ;;  %203 = vmatpush.msrb.mxu0 %v190_v31  ;;  %v188_v33 = vld [vmem:[%s852_s10 + $0x48] sm:$0xff]  ;;  %v186_v35 = vld [vmem:[%s852_s10 + $0x38] sm:$0xff] }
   0xc   :  { %131 = vmatpush.msra.mxu2 %v105_v14  ;;  %163 = vmatpush.msra.mxu3 %v142_v17  ;;  %v187_v34 = vld [vmem:[%s852_s10 + $0x40] sm:$0xff]  ;;  %v185_v36 = vld [vmem:[%s852_s10 + $0x30] sm:$0xff]  ;;  %v184_v37 = vld [vmem:[%s852_s10 + $0x28] sm:$0xff] }
   0xd   :  { %204 = vmatpush.msrb.mxu0 %v189_v32  ;;  %v183_v38 = vld [vmem:[%s852_s10 + $0x20] sm:$0xff]  ;;  %v182_v39 = vld [vmem:[%s852_s10 + $0x18] sm:$0xff]  ;;  %v181_v40 = vld [vmem:[%s852_s10 + $0x10] sm:$0xff] }
   0xe   :  { %164 = vmatpush.msra.mxu3 %v141_v18  ;;  %v180_v41 = vld [vmem:[%s852_s10 + $0x8] sm:$0xff]  ;;  %v485_v42 = vld [vmem:[%s851_s9] ss:$0 sm:$0xff]  ;;  %v446_v58 = vld [vmem:[%s846_s4 + $0x38] sm:$0xff] }
   0xf   :  { %205 = vmatpush.msrb.mxu0 %v188_v33  ;;  %v179_v46 = vld [vmem:[%s852_s10] sm:$0xff]  ;;  %v440_v49 = vld [vmem:[%s845_s3 + $0x8] sm:$0xff]  ;;  %v445_v59 = vld [vmem:[%s846_s4 + $0x30] sm:$0xff]  ;;  %282 = vmatpush.msrb.mxu2 %v446_v58 }
  0x10   :  { %165 = vmatpush.msra.mxu3 %v140_v19  ;;  %249 = vmatpush.msrb.mxu1 %v440_v49  ;;  %v486_v50 = vld [vmem:[%s853_s11] ss:$0 sm:$0xff]  ;;  %v444_v60 = vld [vmem:[%s846_s4 + $0x28] sm:$0xff]  ;;  %v452_v2 = vld [vmem:[%s848_s6 + $0x38] sm:$0xff] }
  0x11   :  { %206 = vmatpush.msrb.mxu0 %v187_v34  ;;  %v219_v53 = vld [vmem:[%s843_s1] sm:$0xff]  ;;  %283 = vmatpush.msrb.mxu2 %v445_v59  ;;  %v441_v62 = vld [vmem:[%s844_s2 + $0x8] sm:$0xff]  ;;  %v451_v3 = vld [vmem:[%s848_s6 + $0x30] sm:$0xff] }
  0x12   :  { %166 = vmatpush.msra.mxu3 %v139_v24  ;;  %v443_v61 = vld [vmem:[%s846_s4 + $0x20] sm:$0xff]  ;;  %v450_v5 = vld [vmem:[%s848_s6 + $0x28] sm:$0xff]  ;;  %v457_v16 = vld [vmem:[%s850_s8 + $0x50] sm:$0xff] }
  0x13   :  { %207 = vmatpush.msrb.mxu0 %v186_v35  ;;  %284 = vmatpush.msrb.mxu2 %v444_v60  ;;  %v459_v10 = vld [vmem:[%s850_s8 + $0x60] sm:$0xff]  ;;  %v456_v17 = vld [vmem:[%s850_s8 + $0x48] sm:$0xff]  ;;  %v475_v24 = vld [vmem:[%s852_s10 + $0xb0] sm:$0xff] }
  0x14   :  { %167 = vmatpush.msra.mxu3 %v138_v25  ;;  %v487_v12 = vld [vmem:[%s847_s5 + $0x1] ss:$0 sm:$0xff]  ;;  %v474_v25 = vld [vmem:[%s852_s10 + $0xa8] sm:$0xff]  ;;  %v468_v31 = vld [vmem:[%s852_s10 + $0x78] sm:$0xff] }
  0x15   :  { %208 = vmatpush.msrb.mxu0 %v185_v36  ;;  %285 = vmatpush.msrb.mxu2 %v443_v61  ;;  %v455_v18 = vld [vmem:[%s850_s8 + $0x40] sm:$0xff]  ;;  %v467_v32 = vld [vmem:[%s852_s10 + $0x70] sm:$0xff]  ;;  %v466_v33 = vld [vmem:[%s852_s10 + $0x68] sm:$0xff] }
  0x16   :  { %168 = vmatpush.msra.mxu3 %v137_v26  ;;  %v488_v19 = vld [vmem:[%s849_s7 + $0x1] ss:$0 sm:$0xff] }
  0x17   :  { %209 = vmatpush.msrb.mxu0 %v184_v37  ;;  %v473_v26 = vld [vmem:[%s852_s10 + $0xa0] sm:$0xff] }
  0x18   :  { %v489_v34 = vld [vmem:[%s851_s9 + $0x1] ss:$0 sm:$0xff] }
  0x19   :  { %210 = vmatpush.msrb.mxu0 %v183_v38  ;;  %v465_v38 = vld [vmem:[%s852_s10 + $0x60] sm:$0xff] }
  0x1b   :  { %211 = vmatpush.msrb.mxu0 %v182_v39 }
  0x1d   :  { %212 = vmatpush.msrb.mxu0 %v181_v40 }
  0x1f   :  { %213 = vmatpush.msrb.mxu0 %v180_v41  ;;  %v490_v41 = vld [vmem:[%s853_s11 + $0x1] ss:$0 sm:$0xff] }
  0x21   :  { %214 = vmatpush.msrb.mxu0 %v179_v46 }
  0x80   :  { %v66_v7 = vpop.f32.mrf.mxu0 }
  0x81   :  { %v610_v8 = vadd.f32 %v66_v7, %v44_v6  ;;  %v449_v6 = vld [vmem:[%s848_s6 + $0x20] sm:$0xff]  ;;  %v462_v7 = vld [vmem:[%s850_s8 + $0x78] sm:$0xff] }
  0x83   :  { %v69_v9 = vmax.f32 %v610_v8, 0.0  ;;  %v461_v8 = vld [vmem:[%s850_s8 + $0x70] sm:$0xff] }
  0x85   :  { %79 = vrot.lane.b32.xlu0 %v69_v9, %s517_s16 }
  0xf7   :  { %v80_v11 = vpop.permute.xlu0 %79 }
  0xf8   :  { %436 = vmatmul.msk.f32.vlgmr.msra.gmra.mxu1 %vm81_vm1, %v80_v11  ;;  %v458_v11 = vld [vmem:[%s850_s8 + $0x58] sm:$0xff] }
  0xf9   :  { %316 = vmatpush.msra.mxu1 %v452_v2 }
  0xfb   :  { %317 = vmatpush.msra.mxu1 %v451_v3 }
  0xfd   :  { %318 = vmatpush.msra.mxu1 %v450_v5 }
  0xff   :  { %319 = vmatpush.msra.mxu1 %v449_v6 }
 0x175   :  { %v101_v21 = vpop.f32.mrf.mxu1 }
 0x176   :  { %v102_v22 = vadd.f32 %v483_v20, %v101_v21 }
 0x178   :  { %v104_v23 = vmax.f32 %v102_v22, 0.0 }
 0x17a   :  { %437 = vmatmul.msk.f32.vlgmr.msra.gmra.mxu2 %vm81_vm1, %v104_v23  ;;  %v476_v23 = vld [vmem:[%s852_s10 + $0xb8] sm:$0xff] }
 0x17b   :  { %350 = vmatpush.msra.mxu2 %v462_v7  ;;  %393 = vmatpush.msrb.mxu3 %v476_v23 }
 0x17d   :  { %351 = vmatpush.msra.mxu2 %v461_v8  ;;  %394 = vmatpush.msrb.mxu3 %v475_v24 }
 0x17f   :  { %395 = vmatpush.msrb.mxu3 %v474_v25 }
 0x181   :  { %396 = vmatpush.msrb.mxu3 %v473_v26 }
 0x1fd   :  { %v133_v28 = vpop.f32.mrf.mxu2 }
 0x1fe   :  { %v134_v29 = vadd.f32 %v484_v27, %v133_v28  ;;  %v472_v27 = vld [vmem:[%s852_s10 + $0x98] sm:$0xff]  ;;  %v471_v28 = vld [vmem:[%s852_s10 + $0x90] sm:$0xff] }
 0x1ff   :  { %397 = vmatpush.msrb.mxu3 %v472_v27 }
 0x200   :  { %v136_v30 = vmax.f32 %v134_v29, 0.0  ;;  %v470_v29 = vld [vmem:[%s852_s10 + $0x88] sm:$0xff] }
 0x201   :  { %398 = vmatpush.msrb.mxu3 %v471_v28 }
 0x202   :  { %438 = vmatmul.msk.f32.vlgmr.msra.gmra.mxu3 %vm149_vm2, %v136_v30  ;;  %v469_v30 = vld [vmem:[%s852_s10 + $0x80] sm:$0xff]  ;;  %s519_s10 = smov [#allocation2]  }
 0x203   :  { %399 = vmatpush.msrb.mxu3 %v470_v29 }
 0x205   :  { %400 = vmatpush.msrb.mxu3 %v469_v30 }
 0x207   :  { %401 = vmatpush.msrb.mxu3 %v468_v31 }
 0x209   :  { %402 = vmatpush.msrb.mxu3 %v467_v32 }
 0x20b   :  { %403 = vmatpush.msrb.mxu3 %v466_v33 }
 0x20d   :  { %404 = vmatpush.msrb.mxu3 %v465_v38 }
 0x285   :  { %v170_v43 = vpop.f32.mrf.mxu3 }
 0x286   :  { %v171_v44 = vadd.f32 %v485_v42, %v170_v43 }
 0x288   :  { %v173_v45 = vmax.f32 %v171_v44, 0.0  ;;  %v479_v44 = vld [vmem:[%s843_s1 + $0x8] sm:$0xff] }
 0x28a   :  { %175 = vrot.lane.b32.xlu0 %v173_v45, %s517_s16 }
 0x2fc   :  { %v176_v47 = vpop.permute.xlu0 %175 }
 0x2fd   :  { %v178_v48 = vsel %vm149_vm2, %v69_v9, %v176_v47  ;;  %v460_v9 = vld [vmem:[%s850_s8 + $0x68] sm:$0xff]  ;;  %s424_s8 = sshll.u32 %s519_s10, 4  ;;  %s425_s8 = int_to_ptr.vmem [resolvable:$true] %s424_s8 }
 0x2fe   :  { %439 = vmatmul.msk.f32.vlgmr.msrb.gmra.mxu0 %vm195_vm3, %v178_v48  ;;  %352 = vmatpush.msra.mxu2 %v460_v9 }
 0x300   :  { %353 = vmatpush.msra.mxu2 %v459_v10 }
 0x302   :  { %354 = vmatpush.msra.mxu2 %v458_v11 }
 0x304   :  { %355 = vmatpush.msra.mxu2 %v457_v16 }
 0x306   :  { %356 = vmatpush.msra.mxu2 %v456_v17 }
 0x308   :  { %357 = vmatpush.msra.mxu2 %v455_v18 }
 0x37b   :  { %v216_v51 = vpop.f32.mrf.mxu0 }
 0x37c   :  { %v217_v52 = vadd.f32 %v486_v50, %v216_v51 }
 0x37e   :  { %221 = vrot.lane.b32.xlu1 %v217_v52, %s518_s21 }
 0x3f0   :  { %v222_v54 = vpop.permute.xlu1 %221 }
 0x3f1   :  { %v224_v55 = vmul.f32 %v222_v54, %v217_v52 }
 0x3f3   :  { %v225_v56 = vmul.f32 %v224_v55, %v219_v53 }
 0x3f5   :  { %v716_v57 = vadd.f32 %v225_v56, %v591_v1 }
 0x3f7   :  { %442 = vmatmul.msk.f32.vlgmr.msrb.gmra.mxu1 %vm45_vm0, %v716_v57 }
 0x474   :  { %v251_v63 = vpop.f32.mrf.mxu1 }
 0x475   :  { %v735_v0 = vadd.f32 %v441_v62, %v251_v63 }
 0x477   :  { %v254_v1 = vmax.f32 %v735_v0, 0.0 }
 0x479   :  { %266 = vrot.lane.b32.xlu1 %v254_v1, %s517_s16 }
 0x4eb   :  { %v267_v4 = vpop.permute.xlu1 %266 }
 0x4ec   :  { %448 = vmatmul.msk.f32.vlgmr.msrb.gmra.mxu2 %vm81_vm1, %v267_v4 }
 0x56f   :  { %v287_v13 = vpop.f32.mrf.mxu2 }
 0x570   :  { %v288_v14 = vadd.f32 %v487_v12, %v287_v13 }
 0x572   :  { %v290_v15 = vmax.f32 %v288_v14, 0.0 }
 0x574   :  { %454 = vmatmul.msk.f32.vlgmr.msra.gmra.mxu1 %vm81_vm1, %v290_v15 }
 0x5f1   :  { %v321_v20 = vpop.f32.mrf.mxu1 }
 0x5f2   :  { %v322_v21 = vadd.f32 %v488_v19, %v321_v20 }
 0x5f4   :  { %v324_v22 = vmax.f32 %v322_v21, 0.0 }
 0x5f6   :  { %464 = vmatmul.msk.f32.vlgmr.msra.gmra.mxu2 %vm149_vm2, %v324_v22 }
 0x679   :  { %v359_v35 = vpop.f32.mrf.mxu2 }
 0x67a   :  { %v360_v36 = vadd.f32 %v489_v34, %v359_v35 }
 0x67c   :  { %v362_v37 = vmax.f32 %v360_v36, 0.0 }
 0x67e   :  { %364 = vrot.lane.b32.xlu2 %v362_v37, %s517_s16 }
 0x6d8   :  { %v365_v39 = vpop.permute.xlu2 %364 }
 0x6d9   :  { %v367_v40 = vsel %vm149_vm2, %v254_v1, %v365_v39 }
 0x6da   :  { %478 = vmatmul.msk.f32.vlgmr.msrb.gmra.mxu3 %vm195_vm3, %v367_v40 }
 0x75d   :  { %v406_v42 = vpop.f32.mrf.mxu3 }
 0x75e   :  { %v407_v43 = vadd.f32 %v490_v41, %v406_v42 }
 0x760   :  { %412 = vrot.lane.b32.xlu2 %v407_v43, %s518_s21 }
 0x7ba   :  { %v413_v45 = vpop.permute.xlu2 %412 }
 0x7bb   :  { %v415_v46 = vmul.f32 %v413_v45, %v407_v43 }
 0x7bd   :  { %v416_v47 = vmul.f32 %v479_v44, %v415_v46 }
 0x7bf   :  { %v417_v48 = vadd.f32 %v416_v47, %v716_v57 }
 0x7c1   :  { %418 = vst.msk [vmem:[#allocation2] sm:$0xff] %vm45_vm0, %v417_v48 }
 0x7c2   :  { %429 = dma.vmem_to_hbm [thread:$0]  %s425_s8, 128, %s427_s24, [#allocation3]  }
 0x7c3   :  { %515 = dma.done.wait [#allocation3], 128  }
 0x7c4   :  { %516 = vsyncadd [#allocation3], 4294967168 }
 0x7c5   :  { %434 = vsyncpa [#allocation3], 1 }

</bundles_post_ra>
